<compile_context>
chip_gen: v6e
topology: v6e:2x2x1
jax: 0.10.0
libtpu: 0.0.40
codegen_flags: <defaults>
</compile_context>

<pallas_src>
import jax
import jax.numpy as jnp
from jax.experimental import pallas as pl
from jax.experimental.pallas import tpu as pltpu


_WHOLE_ARRAY_BYTE_LIMIT = 4 << 20    # x <= 4 MiB  -> single no-grid VMEM block
_TARGET_BLOCK_BYTES = 2 << 20        # ~2 MiB blocks for the tiled grid path


def _scale_mul_kernel(scale_ref, x_ref, o_ref):
    # scale broadcasts against x: (Cb, 1) * (Cb, HW)  or  (1, C) * (rows, C).
    o_ref[...] = x_ref[...] * scale_ref[...]


def _cost(n_elems, itemsize, n_scale):
    return pl.CostEstimate(
        flops=n_elems,
        transcendentals=0,
        bytes_accessed=2 * n_elems * itemsize + n_scale * itemsize,
    )


def layer_scale_mul(x, layer_scale):
    """out = layer_scale[C,1,1] * x[N,C,H,W]  (exact module contract, NCHW).

    Compatibility path: the NCHW view is (C, H*W) = (384, 196), so lanes pad
    196->256 and stores are masked.  Prefer layer_scale_mul_channels_last when
    the surrounding model is NHWC (lane-dense).  No transpose is inserted here
    on purpose -- it would double HBM traffic and erase any in-kernel win.
    """
    N, C, H, W = x.shape
    HW = H * W
    itemsize = x.dtype.itemsize
    scale = layer_scale.reshape(C, 1).astype(x.dtype)     # raw (C,1); no broadcast_to
    cost = _cost(N * C * HW, itemsize, C)

    if N == 1 and C * HW * itemsize <= _WHOLE_ARRAY_BYTE_LIMIT:
        # Small activation: single whole-array VMEM block, no grid / pipeline.
        x2d = x.reshape(C, HW)                            # free view of NCHW
        out2d = pl.pallas_call(
            _scale_mul_kernel,
            out_shape=jax.ShapeDtypeStruct((C, HW), x.dtype),
            in_specs=[
                pl.BlockSpec(memory_space=pltpu.MemorySpace.VMEM),
                pl.BlockSpec(memory_space=pltpu.MemorySpace.VMEM),
            ],
            out_specs=pl.BlockSpec(memory_space=pltpu.MemorySpace.VMEM),
            input_output_aliases={1: 0},
            cost_estimate=cost,
        )(scale, x2d)
        return out2d.reshape(N, C, H, W)

    # Larger activation (or N > 1): tiled, pipelined grid.  The batch repeat of
    # the per-channel scale is handled by the index_map (no broadcast_to), and
    # block size is kept to ~2 MiB so double-buffered in/out tiles fit the
    # scoped VMEM limit on every TPU generation.
    x3d = x.reshape(N, C, HW)                             # free view of NCHW
    cb = C
    while (cb % 2 == 0 and (cb // 2) % 8 == 0
           and cb * HW * itemsize > _TARGET_BLOCK_BYTES):
        cb //= 2
    grid = (N, pl.cdiv(C, cb))
    out3d = pl.pallas_call(
        _scale_mul_kernel,
        out_shape=jax.ShapeDtypeStruct((N, C, HW), x.dtype),
        grid=grid,
        in_specs=[
            pl.BlockSpec((cb, 1), lambda n, c: (c, 0)),
            pl.BlockSpec((None, cb, HW), lambda n, c: (n, c, 0)),
        ],
        out_specs=pl.BlockSpec((None, cb, HW), lambda n, c: (n, c, 0)),
        input_output_aliases={1: 0},
        compiler_params=pltpu.CompilerParams(
            dimension_semantics=("parallel", "parallel")),
        cost_estimate=cost,
    )(scale, x3d)
    return out3d.reshape(N, C, H, W)


def layer_scale_mul_channels_last(x_nhwc, layer_scale):
    """Lane-dense production variant for callers whose activations are NHWC.

    (N*H*W, C) puts C = 384 = 3*128 on lanes -> unmasked 128-lane stores; only
    the sublane axis is padded.  The scale is a single (1, C) row broadcast
    down sublanes.
    """
    N, H, W, C = x_nhwc.shape
    rows = N * H * W
    itemsize = x_nhwc.dtype.itemsize
    x2d = x_nhwc.reshape(rows, C)                         # free view of NHWC
    scale_row = layer_scale.reshape(1, C).astype(x_nhwc.dtype)
    cost = _cost(rows * C, itemsize, C)

    if rows * C * itemsize <= _WHOLE_ARRAY_BYTE_LIMIT:
        out2d = pl.pallas_call(
            _scale_mul_kernel,
            out_shape=jax.ShapeDtypeStruct((rows, C), x_nhwc.dtype),
            in_specs=[
                pl.BlockSpec(memory_space=pltpu.MemorySpace.VMEM),
                pl.BlockSpec(memory_space=pltpu.MemorySpace.VMEM),
            ],
            out_specs=pl.BlockSpec(memory_space=pltpu.MemorySpace.VMEM),
            input_output_aliases={1: 0},
            cost_estimate=cost,
        )(scale_row, x2d)
        return out2d.reshape(N, H, W, C)

    # Large activation: (rb, C) lane-dense blocks (~2 MiB), pipelined.
    rb = max(8, (_TARGET_BLOCK_BYTES // max(1, C * itemsize)) // 8 * 8)
    grid = (pl.cdiv(rows, rb),)
    out2d = pl.pallas_call(
        _scale_mul_kernel,
        out_shape=jax.ShapeDtypeStruct((rows, C), x_nhwc.dtype),
        grid=grid,
        in_specs=[
            pl.BlockSpec((1, C), lambda i: (0, 0)),
            pl.BlockSpec((rb, C), lambda i: (i, 0)),
        ],
        out_specs=pl.BlockSpec((rb, C), lambda i: (i, 0)),
        input_output_aliases={1: 0},
        compiler_params=pltpu.CompilerParams(
            dimension_semantics=("parallel",)),
        cost_estimate=cost,
    )(scale_row, x2d)
    return out2d.reshape(N, H, W, C)


if __name__ == "__main__":
    key = jax.random.PRNGKey(0)
    k1, k2, k3 = jax.random.split(key, 3)

    # Shapes implied by the module's forward.
    x334 = jax.random.normal(k1, (1, 384, 14, 14), dtype=jnp.float32)
    layer_scale28 = jax.random.uniform(k2, (384, 1, 1), dtype=jnp.float32)
    ref = layer_scale28[None, :, :, :] * x334

    # NCHW path (exact module contract; whole-array VMEM, no grid).
    out = jax.block_until_ready(layer_scale_mul(x334, layer_scale28))
    assert out.shape == (1, 384, 14, 14)
    assert jnp.allclose(out, ref, atol=1e-6, rtol=1e-6)

    # Channels-last lane-dense path (recommended when the model is NHWC).
    # The transpose below is test-harness setup only, not part of the kernel path.
    x_nhwc = jnp.transpose(x334, (0, 2, 3, 1))
    out_cl = jax.block_until_ready(
        layer_scale_mul_channels_last(x_nhwc, layer_scale28))
    assert jnp.allclose(out_cl, jnp.transpose(ref, (0, 2, 3, 1)),
                        atol=1e-6, rtol=1e-6)

    # Larger activation exercises the tiled / pipelined grid fallbacks.
    x_big = jax.random.normal(k3, (2, 384, 56, 56), dtype=jnp.float32)
    ref_big = layer_scale28[None, :, :, :] * x_big
    out_big = jax.block_until_ready(layer_scale_mul(x_big, layer_scale28))
    assert jnp.allclose(out_big, ref_big, atol=1e-6, rtol=1e-6)

    x_big_nhwc = jnp.transpose(x_big, (0, 2, 3, 1))
    out_big_cl = jax.block_until_ready(
        layer_scale_mul_channels_last(x_big_nhwc, layer_scale28))
    assert jnp.allclose(out_big_cl, jnp.transpose(ref_big, (0, 2, 3, 1)),
                        atol=1e-6, rtol=1e-6)

    print("KERNEL_OK")
</pallas_src>

<mosaic_0001>
module attributes {stable_mosaic.version = 11 : i64} {
  func.func @_scale_mul_kernel(%arg0: memref<384x1xf32, #tpu.memory_space<vmem>>, %arg1: memref<384x196xf32, #tpu.memory_space<vmem>>, %arg2: memref<384x196xf32, #tpu.memory_space<vmem>>) attributes {dimension_semantics = [], scalar_prefetch = 0 : i64, scratch_operands = 0 : i64, tpu.core_type = #tpu.core_type<tc>} {
    %c0 = arith.constant 0 : index
    %c0_0 = arith.constant 0 : index
    %0 = vector.load %arg1[%c0, %c0_0] : memref<384x196xf32, #tpu.memory_space<vmem>>, vector<384x196xf32>
    %c0_1 = arith.constant 0 : index
    %c0_2 = arith.constant 0 : index
    %1 = vector.load %arg0[%c0_1, %c0_2] : memref<384x1xf32, #tpu.memory_space<vmem>>, vector<384x1xf32>
    %2 = vector.broadcast %1 : vector<384x1xf32> to vector<384x196xf32>
    %3 = arith.mulf %0, %2 : vector<384x196xf32>
    %c0_3 = arith.constant 0 : index
    %c0_4 = arith.constant 0 : index
    %4 = vector.load %arg2[%c0_3, %c0_4] : memref<384x196xf32, #tpu.memory_space<vmem>>, vector<384x196xf32>
    tpu.vector_store %arg2[%c0_3, %c0_4], %3 {strides = array<i32>} : memref<384x196xf32, #tpu.memory_space<vmem>>, vector<384x196xf32>,
    return
  }
}

</mosaic_0001>

<bundles_post_ra>
// kernel: tpu_custom_call.1
= control target key start
LH: loop header
LB: loop body
LE: loop exit
PB: predicated region body
PF: predicated region fallthrough
CT: control target
= control target key end

     0   :  { %v595_v0 = vmov 0   ;;  %vm492_vm0 = vcmask 556032   ;;  %s1379_s0 = inlined_call_operand.vmem [shape: f32[384,1], index: 0, kind: input, shape index: {}]   ;;  %s1380_s1 = inlined_call_operand.vmem [shape: f32[384,196], index: 1, kind: input, shape index: {}, may-alias: {1,2}]   ;;  %s1381_s2 = inlined_call_operand.vmem [shape: f32[384,196], index: 2, kind: output, shape index: {}, may-alias: {1,2}]  }
   0x1   :  { %594 = vset.pattern.permute.xlu1 %v595_v0  ;;  %593 = vset.pattern.permute.xlu0 %v595_v0  ;;  %v109_v1 = vld [vmem:[%s1379_s0 + $0x10] sm:$0xff]  ;;  %v107_v2 = vld [vmem:[%s1379_s0] sm:$0xff]  ;;  %v110_v3 = vld [vmem:[%s1379_s0 + $0x18] sm:$0xff] }
   0x2   :  { %167 = vperm.xlu1 %594, %v109_v1   ;;  %157 = vperm.xlu0 %593, %v107_v2   ;;  %v108_v4 = vld [vmem:[%s1379_s0 + $0x8] sm:$0xff]  ;;  %v111_v6 = vld [vmem:[%s1379_s0 + $0x20] sm:$0xff]  ;;  %v114_v7 = vld [vmem:[%s1379_s0 + $0x38] sm:$0xff] }
   0x3   :  { %v112_v5 = vld [vmem:[%s1379_s0 + $0x28] sm:$0xff]  ;;  %v113_v8 = vld [vmem:[%s1379_s0 + $0x30] sm:$0xff]  ;;  %v115_v10 = vld [vmem:[%s1379_s0 + $0x40] sm:$0xff] }
   0x4   :  { %v116_v9 = vld [vmem:[%s1379_s0 + $0x48] sm:$0xff]  ;;  %v118_v11 = vld [vmem:[%s1379_s0 + $0x58] sm:$0xff]  ;;  %v117_v12 = vld [vmem:[%s1379_s0 + $0x50] sm:$0xff] }
   0x5   :  { %v120_v13 = vld [vmem:[%s1379_s0 + $0x68] sm:$0xff]  ;;  %v119_v14 = vld [vmem:[%s1379_s0 + $0x60] sm:$0xff]  ;;  %v122_v15 = vld [vmem:[%s1379_s0 + $0x78] sm:$0xff] }
   0x6   :  { %172 = vperm.xlu1 %594, %v110_v3   ;;  %162 = vperm.xlu0 %593, %v108_v4   ;;  %v121_v16 = vld [vmem:[%s1379_s0 + $0x70] sm:$0xff]  ;;  %v124_v17 = vld [vmem:[%s1379_s0 + $0x88] sm:$0xff]  ;;  %v123_v18 = vld [vmem:[%s1379_s0 + $0x80] sm:$0xff] }
   0x7   :  { %v126_v19 = vld [vmem:[%s1379_s0 + $0x98] sm:$0xff]  ;;  %v125_v20 = vld [vmem:[%s1379_s0 + $0x90] sm:$0xff]  ;;  %v128_v21 = vld [vmem:[%s1379_s0 + $0xa8] sm:$0xff] }
   0x8   :  { %v127_v22 = vld [vmem:[%s1379_s0 + $0xa0] sm:$0xff]  ;;  %v130_v23 = vld [vmem:[%s1379_s0 + $0xb8] sm:$0xff]  ;;  %v129_v24 = vld [vmem:[%s1379_s0 + $0xb0] sm:$0xff] }
   0x9   :  { %v132_v25 = vld [vmem:[%s1379_s0 + $0xc8] sm:$0xff]  ;;  %v131_v26 = vld [vmem:[%s1379_s0 + $0xc0] sm:$0xff]  ;;  %v134_v27 = vld [vmem:[%s1379_s0 + $0xd8] sm:$0xff] }
   0xa   :  { %182 = vperm.xlu1 %594, %v112_v5   ;;  %177 = vperm.xlu0 %593, %v111_v6   ;;  %v133_v28 = vld [vmem:[%s1379_s0 + $0xd0] sm:$0xff]  ;;  %v136_v29 = vld [vmem:[%s1379_s0 + $0xe8] sm:$0xff]  ;;  %v135_v30 = vld [vmem:[%s1379_s0 + $0xe0] sm:$0xff] }
   0xb   :  { %v138_v31 = vld [vmem:[%s1379_s0 + $0xf8] sm:$0xff]  ;;  %v137_v32 = vld [vmem:[%s1379_s0 + $0xf0] sm:$0xff]  ;;  %v140_v33 = vld [vmem:[%s1379_s0 + $0x108] sm:$0xff] }
   0xc   :  { %v139_v34 = vld [vmem:[%s1379_s0 + $0x100] sm:$0xff]  ;;  %v142_v35 = vld [vmem:[%s1379_s0 + $0x118] sm:$0xff]  ;;  %v141_v36 = vld [vmem:[%s1379_s0 + $0x110] sm:$0xff] }
   0xd   :  { %v144_v37 = vld [vmem:[%s1379_s0 + $0x128] sm:$0xff]  ;;  %v143_v38 = vld [vmem:[%s1379_s0 + $0x120] sm:$0xff]  ;;  %v146_v39 = vld [vmem:[%s1379_s0 + $0x138] sm:$0xff] }
   0xe   :  { %192 = vperm.xlu1 %594, %v114_v7   ;;  %187 = vperm.xlu0 %593, %v113_v8   ;;  %v145_v40 = vld [vmem:[%s1379_s0 + $0x130] sm:$0xff]  ;;  %v148_v41 = vld [vmem:[%s1379_s0 + $0x148] sm:$0xff]  ;;  %v147_v42 = vld [vmem:[%s1379_s0 + $0x140] sm:$0xff] }
   0xf   :  { %v150_v43 = vld [vmem:[%s1379_s0 + $0x158] sm:$0xff]  ;;  %v149_v44 = vld [vmem:[%s1379_s0 + $0x150] sm:$0xff]  ;;  %v152_v45 = vld [vmem:[%s1379_s0 + $0x168] sm:$0xff] }
  0x10   :  { %v151_v46 = vld [vmem:[%s1379_s0 + $0x160] sm:$0xff]  ;;  %v154_v47 = vld [vmem:[%s1379_s0 + $0x178] sm:$0xff]  ;;  %v153_v48 = vld [vmem:[%s1379_s0 + $0x170] sm:$0xff] }
  0x11   :  { %v15_v49 = vld [vmem:[%s1380_s1 + $0x20] sm:$0xff]  ;;  %v16_v50 = vld [vmem:[%s1380_s1 + $0x28] sm:$0xff]  ;;  %v17_v59 = vld [vmem:[%s1380_s1 + $0x30] sm:$0xff] }
  0x12   :  { %202 = vperm.xlu1 %594, %v116_v9   ;;  %197 = vperm.xlu0 %593, %v115_v10   ;;  %v11_v51 = vld [vmem:[%s1380_s1] sm:$0xff]  ;;  %v12_v52 = vld [vmem:[%s1380_s1 + $0x8] sm:$0xff]  ;;  %v18_v60 = vld [vmem:[%s1380_s1 + $0x38] sm:$0xff] }
  0x13   :  { %v13_v61 = vld [vmem:[%s1380_s1 + $0x10] sm:$0xff]  ;;  %v14_v62 = vld [vmem:[%s1380_s1 + $0x18] sm:$0xff] }
  0x16   :  { %212 = vperm.xlu1 %594, %v118_v11   ;;  %207 = vperm.xlu0 %593, %v117_v12  }
  0x1a   :  { %222 = vperm.xlu1 %594, %v120_v13   ;;  %217 = vperm.xlu0 %593, %v119_v14  }
  0x1e   :  { %232 = vperm.xlu1 %594, %v122_v15   ;;  %227 = vperm.xlu0 %593, %v121_v16  }
  0x22   :  { %242 = vperm.xlu1 %594, %v124_v17   ;;  %237 = vperm.xlu0 %593, %v123_v18  }
  0x26   :  { %252 = vperm.xlu1 %594, %v126_v19   ;;  %247 = vperm.xlu0 %593, %v125_v20  }
  0x2a   :  { %262 = vperm.xlu1 %594, %v128_v21   ;;  %257 = vperm.xlu0 %593, %v127_v22  }
  0x2e   :  { %272 = vperm.xlu1 %594, %v130_v23   ;;  %267 = vperm.xlu0 %593, %v129_v24  }
  0x32   :  { %282 = vperm.xlu1 %594, %v132_v25   ;;  %277 = vperm.xlu0 %593, %v131_v26  }
  0x36   :  { %292 = vperm.xlu1 %594, %v134_v27   ;;  %287 = vperm.xlu0 %593, %v133_v28  }
  0x3a   :  { %302 = vperm.xlu1 %594, %v136_v29   ;;  %297 = vperm.xlu0 %593, %v135_v30  }
  0x3e   :  { %312 = vperm.xlu1 %594, %v138_v31   ;;  %307 = vperm.xlu0 %593, %v137_v32  }
  0x42   :  { %322 = vperm.xlu1 %594, %v140_v33   ;;  %317 = vperm.xlu0 %593, %v139_v34  }
  0x46   :  { %332 = vperm.xlu1 %594, %v142_v35   ;;  %327 = vperm.xlu0 %593, %v141_v36  }
  0x4a   :  { %342 = vperm.xlu1 %594, %v144_v37   ;;  %337 = vperm.xlu0 %593, %v143_v38  }
  0x4e   :  { %352 = vperm.xlu1 %594, %v146_v39   ;;  %347 = vperm.xlu0 %593, %v145_v40  }
  0x52   :  { %362 = vperm.xlu1 %594, %v148_v41   ;;  %357 = vperm.xlu0 %593, %v147_v42  }
  0x56   :  { %372 = vperm.xlu1 %594, %v150_v43   ;;  %367 = vperm.xlu0 %593, %v149_v44  }
  0x5a   :  { %382 = vperm.xlu1 %594, %v152_v45   ;;  %377 = vperm.xlu0 %593, %v151_v46  }
  0x5e   :  { %392 = vperm.xlu1 %594, %v154_v47   ;;  %387 = vperm.xlu0 %593, %v153_v48  }
  0x7d   :  { %v168_v53 = vpop.permute.xlu1 %167  ;;  %v158_v54 = vpop.permute.xlu0 %157 }
  0x7e   :  { %v399_v55 = vmul.f32 %v168_v53, %v15_v49  ;;  %v400_v56 = vmul.f32 %v168_v53, %v16_v50  ;;  %v395_v57 = vmul.f32 %v158_v54, %v11_v51  ;;  %v396_v58 = vmul.f32 %v158_v54, %v12_v52 }
  0x80   :  { %496 = vst [vmem:[%s1381_s2 + $0x20] sm:$0xff] %v399_v55  ;;  %497 = vst.msk [vmem:[%s1381_s2 + $0x28] sm:$0xff] %vm492_vm0, %v400_v56 }
  0x81   :  { %491 = vst [vmem:[%s1381_s2] sm:$0xff] %v395_v57  ;;  %493 = vst.msk [vmem:[%s1381_s2 + $0x8] sm:$0xff] %vm492_vm0, %v396_v58  ;;  %v173_v63 = vpop.permute.xlu1 %172  ;;  %v163_v0 = vpop.permute.xlu0 %162 }
  0x82   :  { %v401_v1 = vmul.f32 %v173_v63, %v17_v59  ;;  %v402_v2 = vmul.f32 %v173_v63, %v18_v60  ;;  %v397_v3 = vmul.f32 %v163_v0, %v13_v61  ;;  %v398_v4 = vmul.f32 %v163_v0, %v14_v62 }
  0x85   :  { %v183_v9 = vpop.permute.xlu1 %182  ;;  %v178_v10 = vpop.permute.xlu0 %177 }
  0x88   :  { %v21_v5 = vld [vmem:[%s1380_s1 + $0x50] sm:$0xff]  ;;  %v22_v6 = vld [vmem:[%s1380_s1 + $0x58] sm:$0xff]  ;;  %v19_v7 = vld [vmem:[%s1380_s1 + $0x40] sm:$0xff] }
  0x89   :  { %v20_v8 = vld [vmem:[%s1380_s1 + $0x48] sm:$0xff]  ;;  %v405_v11 = vmul.f32 %v183_v9, %v21_v5  ;;  %v406_v12 = vmul.f32 %v183_v9, %v22_v6  ;;  %v403_v13 = vmul.f32 %v178_v10, %v19_v7  ;;  %v193_v19 = vpop.permute.xlu1 %192  ;;  %v188_v20 = vpop.permute.xlu0 %187 }
  0x8a   :  { %498 = vst [vmem:[%s1381_s2 + $0x30] sm:$0xff] %v401_v1  ;;  %499 = vst.msk [vmem:[%s1381_s2 + $0x38] sm:$0xff] %vm492_vm0, %v402_v2  ;;  %v404_v14 = vmul.f32 %v178_v10, %v20_v8 }
  0x8b   :  { %494 = vst [vmem:[%s1381_s2 + $0x10] sm:$0xff] %v397_v3  ;;  %495 = vst.msk [vmem:[%s1381_s2 + $0x18] sm:$0xff] %vm492_vm0, %v398_v4 }
  0x8d   :  { %v203_v29 = vpop.permute.xlu1 %202  ;;  %v198_v30 = vpop.permute.xlu0 %197 }
  0x91   :  { %v213_v39 = vpop.permute.xlu1 %212  ;;  %v208_v40 = vpop.permute.xlu0 %207 }
  0x92   :  { %v25_v15 = vld [vmem:[%s1380_s1 + $0x70] sm:$0xff]  ;;  %v26_v16 = vld [vmem:[%s1380_s1 + $0x78] sm:$0xff]  ;;  %v23_v17 = vld [vmem:[%s1380_s1 + $0x60] sm:$0xff] }
  0x93   :  { %v24_v18 = vld [vmem:[%s1380_s1 + $0x68] sm:$0xff]  ;;  %v409_v21 = vmul.f32 %v193_v19, %v25_v15  ;;  %v410_v22 = vmul.f32 %v193_v19, %v26_v16  ;;  %v407_v23 = vmul.f32 %v188_v20, %v23_v17 }
  0x94   :  { %502 = vst [vmem:[%s1381_s2 + $0x50] sm:$0xff] %v405_v11  ;;  %503 = vst.msk [vmem:[%s1381_s2 + $0x58] sm:$0xff] %vm492_vm0, %v406_v12  ;;  %v408_v24 = vmul.f32 %v188_v20, %v24_v18 }
  0x95   :  { %500 = vst [vmem:[%s1381_s2 + $0x40] sm:$0xff] %v403_v13  ;;  %501 = vst.msk [vmem:[%s1381_s2 + $0x48] sm:$0xff] %vm492_vm0, %v404_v14  ;;  %v223_v49 = vpop.permute.xlu1 %222  ;;  %v218_v50 = vpop.permute.xlu0 %217 }
  0x99   :  { %v233_v59 = vpop.permute.xlu1 %232  ;;  %v228_v60 = vpop.permute.xlu0 %227 }
  0x9c   :  { %v29_v25 = vld [vmem:[%s1380_s1 + $0x90] sm:$0xff]  ;;  %v30_v26 = vld [vmem:[%s1380_s1 + $0x98] sm:$0xff]  ;;  %v27_v27 = vld [vmem:[%s1380_s1 + $0x80] sm:$0xff] }
  0x9d   :  { %v28_v28 = vld [vmem:[%s1380_s1 + $0x88] sm:$0xff]  ;;  %v413_v31 = vmul.f32 %v203_v29, %v29_v25  ;;  %v414_v32 = vmul.f32 %v203_v29, %v30_v26  ;;  %v411_v33 = vmul.f32 %v198_v30, %v27_v27  ;;  %v243_v5 = vpop.permute.xlu1 %242  ;;  %v238_v6 = vpop.permute.xlu0 %237 }
  0x9e   :  { %506 = vst [vmem:[%s1381_s2 + $0x70] sm:$0xff] %v409_v21  ;;  %507 = vst.msk [vmem:[%s1381_s2 + $0x78] sm:$0xff] %vm492_vm0, %v410_v22  ;;  %v412_v34 = vmul.f32 %v198_v30, %v28_v28 }
  0x9f   :  { %504 = vst [vmem:[%s1381_s2 + $0x60] sm:$0xff] %v407_v23  ;;  %505 = vst.msk [vmem:[%s1381_s2 + $0x68] sm:$0xff] %vm492_vm0, %v408_v24 }
  0xa1   :  { %v253_v15 = vpop.permute.xlu1 %252  ;;  %v248_v16 = vpop.permute.xlu0 %247 }
  0xa5   :  { %v263_v25 = vpop.permute.xlu1 %262  ;;  %v258_v26 = vpop.permute.xlu0 %257 }
  0xa6   :  { %v33_v35 = vld [vmem:[%s1380_s1 + $0xb0] sm:$0xff]  ;;  %v34_v36 = vld [vmem:[%s1380_s1 + $0xb8] sm:$0xff]  ;;  %v31_v37 = vld [vmem:[%s1380_s1 + $0xa0] sm:$0xff] }
  0xa7   :  { %v32_v38 = vld [vmem:[%s1380_s1 + $0xa8] sm:$0xff]  ;;  %v417_v41 = vmul.f32 %v213_v39, %v33_v35  ;;  %v418_v42 = vmul.f32 %v213_v39, %v34_v36  ;;  %v415_v43 = vmul.f32 %v208_v40, %v31_v37 }
  0xa8   :  { %510 = vst [vmem:[%s1381_s2 + $0x90] sm:$0xff] %v413_v31  ;;  %511 = vst.msk [vmem:[%s1381_s2 + $0x98] sm:$0xff] %vm492_vm0, %v414_v32  ;;  %v416_v44 = vmul.f32 %v208_v40, %v32_v38 }
  0xa9   :  { %508 = vst [vmem:[%s1381_s2 + $0x80] sm:$0xff] %v411_v33  ;;  %509 = vst.msk [vmem:[%s1381_s2 + $0x88] sm:$0xff] %vm492_vm0, %v412_v34  ;;  %v273_v35 = vpop.permute.xlu1 %272  ;;  %v268_v36 = vpop.permute.xlu0 %267 }
  0xb0   :  { %v37_v45 = vld [vmem:[%s1380_s1 + $0xd0] sm:$0xff]  ;;  %v38_v46 = vld [vmem:[%s1380_s1 + $0xd8] sm:$0xff]  ;;  %v35_v47 = vld [vmem:[%s1380_s1 + $0xc0] sm:$0xff] }
  0xb1   :  { %v36_v48 = vld [vmem:[%s1380_s1 + $0xc8] sm:$0xff]  ;;  %v421_v51 = vmul.f32 %v223_v49, %v37_v45  ;;  %v422_v52 = vmul.f32 %v223_v49, %v38_v46  ;;  %v419_v53 = vmul.f32 %v218_v50, %v35_v47  ;;  %v283_v45 = vpop.permute.xlu1 %282  ;;  %v278_v46 = vpop.permute.xlu0 %277 }
  0xb2   :  { %514 = vst [vmem:[%s1381_s2 + $0xb0] sm:$0xff] %v417_v41  ;;  %515 = vst.msk [vmem:[%s1381_s2 + $0xb8] sm:$0xff] %vm492_vm0, %v418_v42  ;;  %v420_v54 = vmul.f32 %v218_v50, %v36_v48 }
  0xb3   :  { %512 = vst [vmem:[%s1381_s2 + $0xa0] sm:$0xff] %v415_v43  ;;  %513 = vst.msk [vmem:[%s1381_s2 + $0xa8] sm:$0xff] %vm492_vm0, %v416_v44 }
  0xba   :  { %v41_v55 = vld [vmem:[%s1380_s1 + $0xf0] sm:$0xff]  ;;  %v42_v56 = vld [vmem:[%s1380_s1 + $0xf8] sm:$0xff]  ;;  %v39_v57 = vld [vmem:[%s1380_s1 + $0xe0] sm:$0xff] }
  0xbb   :  { %v40_v58 = vld [vmem:[%s1380_s1 + $0xe8] sm:$0xff]  ;;  %v425_v61 = vmul.f32 %v233_v59, %v41_v55  ;;  %v426_v62 = vmul.f32 %v233_v59, %v42_v56  ;;  %v423_v63 = vmul.f32 %v228_v60, %v39_v57  ;;  %v293_v55 = vpop.permute.xlu1 %292  ;;  %v288_v56 = vpop.permute.xlu0 %287 }
  0xbc   :  { %518 = vst [vmem:[%s1381_s2 + $0xd0] sm:$0xff] %v421_v51  ;;  %519 = vst.msk [vmem:[%s1381_s2 + $0xd8] sm:$0xff] %vm492_vm0, %v422_v52  ;;  %v424_v0 = vmul.f32 %v228_v60, %v40_v58 }
  0xbd   :  { %516 = vst [vmem:[%s1381_s2 + $0xc0] sm:$0xff] %v419_v53  ;;  %517 = vst.msk [vmem:[%s1381_s2 + $0xc8] sm:$0xff] %vm492_vm0, %v420_v54 }
  0xc4   :  { %v45_v1 = vld [vmem:[%s1380_s1 + $0x110] sm:$0xff]  ;;  %v46_v2 = vld [vmem:[%s1380_s1 + $0x118] sm:$0xff]  ;;  %v43_v3 = vld [vmem:[%s1380_s1 + $0x100] sm:$0xff] }
  0xc5   :  { %v44_v4 = vld [vmem:[%s1380_s1 + $0x108] sm:$0xff]  ;;  %v429_v7 = vmul.f32 %v243_v5, %v45_v1  ;;  %v430_v8 = vmul.f32 %v243_v5, %v46_v2  ;;  %v427_v9 = vmul.f32 %v238_v6, %v43_v3  ;;  %v303_v1 = vpop.permute.xlu1 %302  ;;  %v298_v2 = vpop.permute.xlu0 %297 }
  0xc6   :  { %522 = vst [vmem:[%s1381_s2 + $0xf0] sm:$0xff] %v425_v61  ;;  %523 = vst.msk [vmem:[%s1381_s2 + $0xf8] sm:$0xff] %vm492_vm0, %v426_v62  ;;  %v428_v10 = vmul.f32 %v238_v6, %v44_v4 }
  0xc7   :  { %520 = vst [vmem:[%s1381_s2 + $0xe0] sm:$0xff] %v423_v63  ;;  %521 = vst.msk [vmem:[%s1381_s2 + $0xe8] sm:$0xff] %vm492_vm0, %v424_v0 }
  0xce   :  { %v49_v11 = vld [vmem:[%s1380_s1 + $0x130] sm:$0xff]  ;;  %v50_v12 = vld [vmem:[%s1380_s1 + $0x138] sm:$0xff]  ;;  %v47_v13 = vld [vmem:[%s1380_s1 + $0x120] sm:$0xff] }
  0xcf   :  { %v48_v14 = vld [vmem:[%s1380_s1 + $0x128] sm:$0xff]  ;;  %v433_v17 = vmul.f32 %v253_v15, %v49_v11  ;;  %v434_v18 = vmul.f32 %v253_v15, %v50_v12  ;;  %v431_v19 = vmul.f32 %v248_v16, %v47_v13  ;;  %v313_v11 = vpop.permute.xlu1 %312  ;;  %v308_v12 = vpop.permute.xlu0 %307 }
  0xd0   :  { %526 = vst [vmem:[%s1381_s2 + $0x110] sm:$0xff] %v429_v7  ;;  %527 = vst.msk [vmem:[%s1381_s2 + $0x118] sm:$0xff] %vm492_vm0, %v430_v8  ;;  %v432_v20 = vmul.f32 %v248_v16, %v48_v14 }
  0xd1   :  { %524 = vst [vmem:[%s1381_s2 + $0x100] sm:$0xff] %v427_v9  ;;  %525 = vst.msk [vmem:[%s1381_s2 + $0x108] sm:$0xff] %vm492_vm0, %v428_v10 }
  0xd8   :  { %v53_v21 = vld [vmem:[%s1380_s1 + $0x150] sm:$0xff]  ;;  %v54_v22 = vld [vmem:[%s1380_s1 + $0x158] sm:$0xff]  ;;  %v51_v23 = vld [vmem:[%s1380_s1 + $0x140] sm:$0xff] }
  0xd9   :  { %v52_v24 = vld [vmem:[%s1380_s1 + $0x148] sm:$0xff]  ;;  %v437_v27 = vmul.f32 %v263_v25, %v53_v21  ;;  %v438_v28 = vmul.f32 %v263_v25, %v54_v22  ;;  %v435_v29 = vmul.f32 %v258_v26, %v51_v23  ;;  %v323_v21 = vpop.permute.xlu1 %322  ;;  %v318_v22 = vpop.permute.xlu0 %317 }
  0xda   :  { %530 = vst [vmem:[%s1381_s2 + $0x130] sm:$0xff] %v433_v17  ;;  %531 = vst.msk [vmem:[%s1381_s2 + $0x138] sm:$0xff] %vm492_vm0, %v434_v18  ;;  %v436_v30 = vmul.f32 %v258_v26, %v52_v24 }
  0xdb   :  { %528 = vst [vmem:[%s1381_s2 + $0x120] sm:$0xff] %v431_v19  ;;  %529 = vst.msk [vmem:[%s1381_s2 + $0x128] sm:$0xff] %vm492_vm0, %v432_v20 }
  0xe2   :  { %v57_v31 = vld [vmem:[%s1380_s1 + $0x170] sm:$0xff]  ;;  %v58_v32 = vld [vmem:[%s1380_s1 + $0x178] sm:$0xff]  ;;  %v55_v33 = vld [vmem:[%s1380_s1 + $0x160] sm:$0xff] }
  0xe3   :  { %v56_v34 = vld [vmem:[%s1380_s1 + $0x168] sm:$0xff]  ;;  %v441_v37 = vmul.f32 %v273_v35, %v57_v31  ;;  %v442_v38 = vmul.f32 %v273_v35, %v58_v32  ;;  %v439_v39 = vmul.f32 %v268_v36, %v55_v33  ;;  %v333_v31 = vpop.permute.xlu1 %332  ;;  %v328_v32 = vpop.permute.xlu0 %327 }
  0xe4   :  { %534 = vst [vmem:[%s1381_s2 + $0x150] sm:$0xff] %v437_v27  ;;  %535 = vst.msk [vmem:[%s1381_s2 + $0x158] sm:$0xff] %vm492_vm0, %v438_v28  ;;  %v440_v40 = vmul.f32 %v268_v36, %v56_v34 }
  0xe5   :  { %532 = vst [vmem:[%s1381_s2 + $0x140] sm:$0xff] %v435_v29  ;;  %533 = vst.msk [vmem:[%s1381_s2 + $0x148] sm:$0xff] %vm492_vm0, %v436_v30 }
  0xec   :  { %v61_v41 = vld [vmem:[%s1380_s1 + $0x190] sm:$0xff]  ;;  %v62_v42 = vld [vmem:[%s1380_s1 + $0x198] sm:$0xff]  ;;  %v59_v43 = vld [vmem:[%s1380_s1 + $0x180] sm:$0xff] }
  0xed   :  { %v60_v44 = vld [vmem:[%s1380_s1 + $0x188] sm:$0xff]  ;;  %v445_v47 = vmul.f32 %v283_v45, %v61_v41  ;;  %v446_v48 = vmul.f32 %v283_v45, %v62_v42  ;;  %v443_v49 = vmul.f32 %v278_v46, %v59_v43  ;;  %v343_v41 = vpop.permute.xlu1 %342  ;;  %v338_v42 = vpop.permute.xlu0 %337 }
  0xee   :  { %538 = vst [vmem:[%s1381_s2 + $0x170] sm:$0xff] %v441_v37  ;;  %539 = vst.msk [vmem:[%s1381_s2 + $0x178] sm:$0xff] %vm492_vm0, %v442_v38  ;;  %v444_v50 = vmul.f32 %v278_v46, %v60_v44 }
  0xef   :  { %536 = vst [vmem:[%s1381_s2 + $0x160] sm:$0xff] %v439_v39  ;;  %537 = vst.msk [vmem:[%s1381_s2 + $0x168] sm:$0xff] %vm492_vm0, %v440_v40 }
  0xf6   :  { %v65_v51 = vld [vmem:[%s1380_s1 + $0x1b0] sm:$0xff]  ;;  %v66_v52 = vld [vmem:[%s1380_s1 + $0x1b8] sm:$0xff]  ;;  %v63_v53 = vld [vmem:[%s1380_s1 + $0x1a0] sm:$0xff] }
  0xf7   :  { %v64_v54 = vld [vmem:[%s1380_s1 + $0x1a8] sm:$0xff]  ;;  %v449_v57 = vmul.f32 %v293_v55, %v65_v51  ;;  %v450_v58 = vmul.f32 %v293_v55, %v66_v52  ;;  %v447_v59 = vmul.f32 %v288_v56, %v63_v53  ;;  %v353_v51 = vpop.permute.xlu1 %352  ;;  %v348_v52 = vpop.permute.xlu0 %347 }
  0xf8   :  { %542 = vst [vmem:[%s1381_s2 + $0x190] sm:$0xff] %v445_v47  ;;  %543 = vst.msk [vmem:[%s1381_s2 + $0x198] sm:$0xff] %vm492_vm0, %v446_v48  ;;  %v448_v60 = vmul.f32 %v288_v56, %v64_v54 }
  0xf9   :  { %540 = vst [vmem:[%s1381_s2 + $0x180] sm:$0xff] %v443_v49  ;;  %541 = vst.msk [vmem:[%s1381_s2 + $0x188] sm:$0xff] %vm492_vm0, %v444_v50 }
 0x100   :  { %v69_v61 = vld [vmem:[%s1380_s1 + $0x1d0] sm:$0xff]  ;;  %v70_v62 = vld [vmem:[%s1380_s1 + $0x1d8] sm:$0xff]  ;;  %v67_v63 = vld [vmem:[%s1380_s1 + $0x1c0] sm:$0xff] }
 0x101   :  { %v68_v0 = vld [vmem:[%s1380_s1 + $0x1c8] sm:$0xff]  ;;  %v453_v3 = vmul.f32 %v303_v1, %v69_v61  ;;  %v454_v4 = vmul.f32 %v303_v1, %v70_v62  ;;  %v451_v5 = vmul.f32 %v298_v2, %v67_v63  ;;  %v363_v61 = vpop.permute.xlu1 %362  ;;  %v358_v62 = vpop.permute.xlu0 %357 }
 0x102   :  { %546 = vst [vmem:[%s1381_s2 + $0x1b0] sm:$0xff] %v449_v57  ;;  %547 = vst.msk [vmem:[%s1381_s2 + $0x1b8] sm:$0xff] %vm492_vm0, %v450_v58  ;;  %v452_v6 = vmul.f32 %v298_v2, %v68_v0 }
 0x103   :  { %544 = vst [vmem:[%s1381_s2 + $0x1a0] sm:$0xff] %v447_v59  ;;  %545 = vst.msk [vmem:[%s1381_s2 + $0x1a8] sm:$0xff] %vm492_vm0, %v448_v60 }
 0x10a   :  { %v73_v7 = vld [vmem:[%s1380_s1 + $0x1f0] sm:$0xff]  ;;  %v74_v8 = vld [vmem:[%s1380_s1 + $0x1f8] sm:$0xff]  ;;  %v71_v9 = vld [vmem:[%s1380_s1 + $0x1e0] sm:$0xff] }
 0x10b   :  { %v72_v10 = vld [vmem:[%s1380_s1 + $0x1e8] sm:$0xff]  ;;  %v457_v13 = vmul.f32 %v313_v11, %v73_v7  ;;  %v458_v14 = vmul.f32 %v313_v11, %v74_v8  ;;  %v455_v15 = vmul.f32 %v308_v12, %v71_v9  ;;  %v373_v7 = vpop.permute.xlu1 %372  ;;  %v368_v8 = vpop.permute.xlu0 %367 }
 0x10c   :  { %550 = vst [vmem:[%s1381_s2 + $0x1d0] sm:$0xff] %v453_v3  ;;  %551 = vst.msk [vmem:[%s1381_s2 + $0x1d8] sm:$0xff] %vm492_vm0, %v454_v4  ;;  %v456_v16 = vmul.f32 %v308_v12, %v72_v10 }
 0x10d   :  { %548 = vst [vmem:[%s1381_s2 + $0x1c0] sm:$0xff] %v451_v5  ;;  %549 = vst.msk [vmem:[%s1381_s2 + $0x1c8] sm:$0xff] %vm492_vm0, %v452_v6 }
 0x114   :  { %v77_v17 = vld [vmem:[%s1380_s1 + $0x210] sm:$0xff]  ;;  %v78_v18 = vld [vmem:[%s1380_s1 + $0x218] sm:$0xff]  ;;  %v75_v19 = vld [vmem:[%s1380_s1 + $0x200] sm:$0xff] }
 0x115   :  { %v76_v20 = vld [vmem:[%s1380_s1 + $0x208] sm:$0xff]  ;;  %v461_v23 = vmul.f32 %v323_v21, %v77_v17  ;;  %v462_v24 = vmul.f32 %v323_v21, %v78_v18  ;;  %v459_v25 = vmul.f32 %v318_v22, %v75_v19  ;;  %v383_v17 = vpop.permute.xlu1 %382  ;;  %v378_v18 = vpop.permute.xlu0 %377 }
 0x116   :  { %554 = vst [vmem:[%s1381_s2 + $0x1f0] sm:$0xff] %v457_v13  ;;  %555 = vst.msk [vmem:[%s1381_s2 + $0x1f8] sm:$0xff] %vm492_vm0, %v458_v14  ;;  %v460_v26 = vmul.f32 %v318_v22, %v76_v20 }
 0x117   :  { %552 = vst [vmem:[%s1381_s2 + $0x1e0] sm:$0xff] %v455_v15  ;;  %553 = vst.msk [vmem:[%s1381_s2 + $0x1e8] sm:$0xff] %vm492_vm0, %v456_v16 }
 0x11e   :  { %v81_v27 = vld [vmem:[%s1380_s1 + $0x230] sm:$0xff]  ;;  %v82_v28 = vld [vmem:[%s1380_s1 + $0x238] sm:$0xff]  ;;  %v79_v29 = vld [vmem:[%s1380_s1 + $0x220] sm:$0xff] }
 0x11f   :  { %v80_v30 = vld [vmem:[%s1380_s1 + $0x228] sm:$0xff]  ;;  %v465_v33 = vmul.f32 %v333_v31, %v81_v27  ;;  %v466_v34 = vmul.f32 %v333_v31, %v82_v28  ;;  %v463_v35 = vmul.f32 %v328_v32, %v79_v29  ;;  %v393_v27 = vpop.permute.xlu1 %392  ;;  %v388_v28 = vpop.permute.xlu0 %387 }
 0x120   :  { %558 = vst [vmem:[%s1381_s2 + $0x210] sm:$0xff] %v461_v23  ;;  %559 = vst.msk [vmem:[%s1381_s2 + $0x218] sm:$0xff] %vm492_vm0, %v462_v24  ;;  %v464_v36 = vmul.f32 %v328_v32, %v80_v30 }
 0x121   :  { %556 = vst [vmem:[%s1381_s2 + $0x200] sm:$0xff] %v459_v25  ;;  %557 = vst.msk [vmem:[%s1381_s2 + $0x208] sm:$0xff] %vm492_vm0, %v460_v26 }
 0x128   :  { %v85_v37 = vld [vmem:[%s1380_s1 + $0x250] sm:$0xff]  ;;  %v86_v38 = vld [vmem:[%s1380_s1 + $0x258] sm:$0xff]  ;;  %v83_v39 = vld [vmem:[%s1380_s1 + $0x240] sm:$0xff] }
 0x129   :  { %v84_v40 = vld [vmem:[%s1380_s1 + $0x248] sm:$0xff]  ;;  %v469_v43 = vmul.f32 %v343_v41, %v85_v37  ;;  %v470_v44 = vmul.f32 %v343_v41, %v86_v38  ;;  %v467_v45 = vmul.f32 %v338_v42, %v83_v39 }
 0x12a   :  { %562 = vst [vmem:[%s1381_s2 + $0x230] sm:$0xff] %v465_v33  ;;  %563 = vst.msk [vmem:[%s1381_s2 + $0x238] sm:$0xff] %vm492_vm0, %v466_v34  ;;  %v468_v46 = vmul.f32 %v338_v42, %v84_v40 }
 0x12b   :  { %560 = vst [vmem:[%s1381_s2 + $0x220] sm:$0xff] %v463_v35  ;;  %561 = vst.msk [vmem:[%s1381_s2 + $0x228] sm:$0xff] %vm492_vm0, %v464_v36 }
 0x132   :  { %v89_v47 = vld [vmem:[%s1380_s1 + $0x270] sm:$0xff]  ;;  %v90_v48 = vld [vmem:[%s1380_s1 + $0x278] sm:$0xff]  ;;  %v87_v49 = vld [vmem:[%s1380_s1 + $0x260] sm:$0xff] }
 0x133   :  { %v88_v50 = vld [vmem:[%s1380_s1 + $0x268] sm:$0xff]  ;;  %v473_v53 = vmul.f32 %v353_v51, %v89_v47  ;;  %v474_v54 = vmul.f32 %v353_v51, %v90_v48  ;;  %v471_v55 = vmul.f32 %v348_v52, %v87_v49 }
 0x134   :  { %566 = vst [vmem:[%s1381_s2 + $0x250] sm:$0xff] %v469_v43  ;;  %567 = vst.msk [vmem:[%s1381_s2 + $0x258] sm:$0xff] %vm492_vm0, %v470_v44  ;;  %v472_v56 = vmul.f32 %v348_v52, %v88_v50 }
 0x135   :  { %564 = vst [vmem:[%s1381_s2 + $0x240] sm:$0xff] %v467_v45  ;;  %565 = vst.msk [vmem:[%s1381_s2 + $0x248] sm:$0xff] %vm492_vm0, %v468_v46 }
 0x13c   :  { %v93_v57 = vld [vmem:[%s1380_s1 + $0x290] sm:$0xff]  ;;  %v94_v58 = vld [vmem:[%s1380_s1 + $0x298] sm:$0xff]  ;;  %v91_v59 = vld [vmem:[%s1380_s1 + $0x280] sm:$0xff] }
 0x13d   :  { %v92_v60 = vld [vmem:[%s1380_s1 + $0x288] sm:$0xff]  ;;  %v477_v63 = vmul.f32 %v363_v61, %v93_v57  ;;  %v478_v0 = vmul.f32 %v363_v61, %v94_v58  ;;  %v475_v1 = vmul.f32 %v358_v62, %v91_v59 }
 0x13e   :  { %570 = vst [vmem:[%s1381_s2 + $0x270] sm:$0xff] %v473_v53  ;;  %571 = vst.msk [vmem:[%s1381_s2 + $0x278] sm:$0xff] %vm492_vm0, %v474_v54  ;;  %v476_v2 = vmul.f32 %v358_v62, %v92_v60 }
 0x13f   :  { %568 = vst [vmem:[%s1381_s2 + $0x260] sm:$0xff] %v471_v55  ;;  %569 = vst.msk [vmem:[%s1381_s2 + $0x268] sm:$0xff] %vm492_vm0, %v472_v56 }
 0x146   :  { %v97_v3 = vld [vmem:[%s1380_s1 + $0x2b0] sm:$0xff]  ;;  %v98_v4 = vld [vmem:[%s1380_s1 + $0x2b8] sm:$0xff]  ;;  %v95_v5 = vld [vmem:[%s1380_s1 + $0x2a0] sm:$0xff] }
 0x147   :  { %v96_v6 = vld [vmem:[%s1380_s1 + $0x2a8] sm:$0xff]  ;;  %v481_v9 = vmul.f32 %v373_v7, %v97_v3  ;;  %v482_v10 = vmul.f32 %v373_v7, %v98_v4  ;;  %v479_v11 = vmul.f32 %v368_v8, %v95_v5 }
 0x148   :  { %574 = vst [vmem:[%s1381_s2 + $0x290] sm:$0xff] %v477_v63  ;;  %575 = vst.msk [vmem:[%s1381_s2 + $0x298] sm:$0xff] %vm492_vm0, %v478_v0  ;;  %v480_v12 = vmul.f32 %v368_v8, %v96_v6 }
 0x149   :  { %572 = vst [vmem:[%s1381_s2 + $0x280] sm:$0xff] %v475_v1  ;;  %573 = vst.msk [vmem:[%s1381_s2 + $0x288] sm:$0xff] %vm492_vm0, %v476_v2 }
 0x150   :  { %v101_v13 = vld [vmem:[%s1380_s1 + $0x2d0] sm:$0xff]  ;;  %v102_v14 = vld [vmem:[%s1380_s1 + $0x2d8] sm:$0xff]  ;;  %v99_v15 = vld [vmem:[%s1380_s1 + $0x2c0] sm:$0xff] }
 0x151   :  { %v100_v16 = vld [vmem:[%s1380_s1 + $0x2c8] sm:$0xff]  ;;  %v485_v19 = vmul.f32 %v383_v17, %v101_v13  ;;  %v486_v20 = vmul.f32 %v383_v17, %v102_v14  ;;  %v483_v21 = vmul.f32 %v378_v18, %v99_v15 }
 0x152   :  { %578 = vst [vmem:[%s1381_s2 + $0x2b0] sm:$0xff] %v481_v9  ;;  %579 = vst.msk [vmem:[%s1381_s2 + $0x2b8] sm:$0xff] %vm492_vm0, %v482_v10  ;;  %v484_v22 = vmul.f32 %v378_v18, %v100_v16 }
 0x153   :  { %576 = vst [vmem:[%s1381_s2 + $0x2a0] sm:$0xff] %v479_v11  ;;  %577 = vst.msk [vmem:[%s1381_s2 + $0x2a8] sm:$0xff] %vm492_vm0, %v480_v12 }
 0x15a   :  { %v105_v23 = vld [vmem:[%s1380_s1 + $0x2f0] sm:$0xff]  ;;  %v106_v24 = vld [vmem:[%s1380_s1 + $0x2f8] sm:$0xff]  ;;  %v103_v25 = vld [vmem:[%s1380_s1 + $0x2e0] sm:$0xff] }
 0x15b   :  { %v104_v26 = vld [vmem:[%s1380_s1 + $0x2e8] sm:$0xff]  ;;  %v489_v29 = vmul.f32 %v393_v27, %v105_v23  ;;  %v490_v30 = vmul.f32 %v393_v27, %v106_v24  ;;  %v487_v31 = vmul.f32 %v388_v28, %v103_v25 }
 0x15c   :  { %582 = vst [vmem:[%s1381_s2 + $0x2d0] sm:$0xff] %v485_v19  ;;  %583 = vst.msk [vmem:[%s1381_s2 + $0x2d8] sm:$0xff] %vm492_vm0, %v486_v20  ;;  %v488_v32 = vmul.f32 %v388_v28, %v104_v26 }
 0x15d   :  { %580 = vst [vmem:[%s1381_s2 + $0x2c0] sm:$0xff] %v483_v21  ;;  %581 = vst.msk [vmem:[%s1381_s2 + $0x2c8] sm:$0xff] %vm492_vm0, %v484_v22 }
 0x15e   :  { %586 = vst [vmem:[%s1381_s2 + $0x2f0] sm:$0xff] %v489_v29  ;;  %587 = vst.msk [vmem:[%s1381_s2 + $0x2f8] sm:$0xff] %vm492_vm0, %v490_v30 }
 0x15f   :  { %584 = vst [vmem:[%s1381_s2 + $0x2e0] sm:$0xff] %v487_v31  ;;  %585 = vst.msk [vmem:[%s1381_s2 + $0x2e8] sm:$0xff] %vm492_vm0, %v488_v32 }

</bundles_post_ra>
